<compile_context>
chip_gen: v7x
topology: tpu7x:2x2x1
jax: 0.10.0
libtpu: 0.0.40
codegen_flags: <defaults>
</compile_context>

<pallas_src>
import functools

import jax
import jax.numpy as jnp
from jax.experimental import pallas as pl
from jax.experimental.pallas import tpu as pltpu

EPS = 1e-5        # torch LayerNorm default eps
NEG_BIG = -1e30   # f32 bias on padded class lanes -> probability ~0 under softmax


# ---------------------------------------------------------------- kernel ----

def _fused_forward_kernel(x_ref, a_ref, p_ref, invc_ref,
                          w0_ref, b0_ref,
                          cw_ref, cb_ref,
                          w1cat_ref, b1cat_ref,
                          w2_ref, b2_ref,
                          o_ref):
    """Whole BaselineModel forward in a single Pallas invocation.

      h = relu(x @ W0 + b0)                              lin1 + ReLU (dropout: eval no-op)
      for l: h = relu(A_hat @ (h @ Wc[l]) + bc[l])       GCNConv + ReLU
             h = (h - mean(h)) * rsqrt(var(h) + eps)     LayerNorm over the WHOLE tensor
      g = (P_onehot @ h) * inv_counts                    global mean pool
      z = relu(g @ W1cat + b1cat)                        all T hidden projections, one matmul
      o[t] = log_softmax(z[:, t*H:(t+1)*H] @ W2[t] + b2[t])
    """
    bf16 = jnp.bfloat16
    f32 = jnp.float32

    # lin1 + ReLU; bias/activation math in f32, MXU operands in bf16.
    h = jnp.dot(x_ref[...].astype(bf16), w0_ref[...], preferred_element_type=f32)
    h = jnp.maximum(h + b0_ref[...], 0.0)

    a = a_ref[...]                                    # bf16 A_hat, loaded once
    num_layers = cw_ref.shape[0]
    inv_n = 1.0 / float(h.shape[0] * h.shape[1])

    def layer_body(l, h):
        # stream this layer's weight / bias from VMEM via dynamic index
        xw = jnp.dot(h.astype(bf16), cw_ref[l], preferred_element_type=f32)
        h = jnp.dot(a, xw.astype(bf16), preferred_element_type=f32) + cb_ref[l]
        h = jnp.maximum(h, 0.0)
        # single-pass whole-tensor LayerNorm (biased var), clamped for safety
        s = jnp.sum(h)
        ss = jnp.sum(h * h)
        mu = s * inv_n
        var = jnp.maximum(ss * inv_n - mu * mu, 0.0)
        return (h - mu) * jax.lax.rsqrt(var + EPS)

    h = jax.lax.fori_loop(0, num_layers, layer_body, h)

    # global mean pool: exact 0/1 one-hot matmul (bf16), scale by 1/count in f32
    g = jnp.dot(p_ref[...], h.astype(bf16), preferred_element_type=f32)
    g = g * invc_ref[...]                             # [B, H]

    # heads: all T hidden projections as one [B,H] @ [H, T*H] matmul
    zcat = jnp.dot(g.astype(bf16), w1cat_ref[...], preferred_element_type=f32)
    zcat = jnp.maximum(zcat + b1cat_ref[...], 0.0)    # [B, T*H]

    num_tasks, hdim, _ = w2_ref.shape
    logits = []
    for t in range(num_tasks):                        # static unroll, T is small
        z_t = zcat[:, t * hdim:(t + 1) * hdim]
        logits.append(jnp.dot(z_t.astype(bf16), w2_ref[t],
                              preferred_element_type=f32) + b2_ref[t])
    logits = jnp.stack(logits, axis=0)                # [T, B, C_pad] f32
    m = jnp.max(logits, axis=-1, keepdims=True)
    lse = jnp.log(jnp.sum(jnp.exp(logits - m), axis=-1, keepdims=True)) + m
    o_ref[...] = logits - lse                         # single lane-dense store


def fused_forward(x, a_hat_bf16, pool_onehot_bf16, inv_counts, params, num_classes):
    num_tasks = params["head_w2_pad"].shape[0]
    c_pad = params["head_w2_pad"].shape[2]
    bsz = pool_onehot_bf16.shape[0]

    operands = (x, a_hat_bf16, pool_onehot_bf16, inv_counts,
                params["lin1_w"], params["lin1_b"],
                params["conv_w"], params["conv_b"],
                params["head_w1cat"], params["head_b1cat"],
                params["head_w2_pad"], params["head_b2_pad"])

    out_bytes = num_tasks * bsz * c_pad * 4
    in_bytes = sum(int(a.size) * a.dtype.itemsize for a in operands)
    vmem_limit = int(min(64 << 20, max(2 * (in_bytes + out_bytes) + (4 << 20),
                                       32 << 20)))

    out = pl.pallas_call(
        _fused_forward_kernel,
        out_shape=jax.ShapeDtypeStruct((num_tasks, bsz, c_pad), jnp.float32),
        compiler_params=pltpu.CompilerParams(vmem_limit_bytes=vmem_limit),
    )(*operands)
    return out[:, :, :num_classes]                    # [T, B, C]


# --------------------------------------------------------------- JAX glue ---

def build_gcn_adjacency(edge_index, num_nodes):
    """Dense A_hat = D^{-1/2} (A + I) D^{-1/2}, edge weights = 1 (PyG GCNConv)."""
    row, col = edge_index[0], edge_index[1]           # source -> target
    loop = jnp.arange(num_nodes, dtype=edge_index.dtype)
    row = jnp.concatenate([row, loop])
    col = jnp.concatenate([col, loop])
    w = jnp.ones(row.shape[0], jnp.float32)
    deg = jnp.zeros((num_nodes,), jnp.float32).at[col].add(w)
    dinv = jnp.where(deg > 0.0, 1.0 / jnp.sqrt(deg), 0.0)
    norm = dinv[row] * w * dinv[col]
    a_hat = jnp.zeros((num_nodes, num_nodes), jnp.float32).at[col, row].add(norm)
    return a_hat


def build_mean_pool(batch, num_graphs):
    """Exact 0/1 one-hot pooling matrix (bf16) and f32 reciprocal counts."""
    onehot = (batch[None, :] == jnp.arange(num_graphs)[:, None]).astype(jnp.float32)
    counts = jnp.maximum(onehot.sum(axis=1, keepdims=True), 1.0)
    return onehot.astype(jnp.bfloat16), (1.0 / counts).astype(jnp.float32)


def init_params(key, in_features, hidden_dim, num_classes, layer_num, num_tasks):
    """Returns kernel-ready params: bf16 MXU weights, f32 biases, class-dim
    padding and head-W1 concatenation done once here (not per forward)."""
    num_keys = 2 + 2 * layer_num + 4 * num_tasks
    ks = jax.random.split(key, num_keys)
    it = iter(ks)

    def dense(k, fan_in, shape):
        bound = 1.0 / jnp.sqrt(fan_in)
        return jax.random.uniform(k, shape, jnp.float32, -bound, bound)

    params = {
        "lin1_w": dense(next(it), in_features, (in_features, hidden_dim)).astype(jnp.bfloat16),
        "lin1_b": dense(next(it), in_features, (hidden_dim,)).reshape(1, hidden_dim),
    }
    cw, cb = [], []
    for _ in range(layer_num):
        cw.append(dense(next(it), hidden_dim, (hidden_dim, hidden_dim)))
        cb.append(dense(next(it), hidden_dim, (hidden_dim,)))
    params["conv_w"] = jnp.stack(cw).astype(jnp.bfloat16)                    # [L, H, H]
    params["conv_b"] = jnp.stack(cb).reshape(layer_num, 1, hidden_dim)       # [L, 1, H]

    w1, b1, w2, b2 = [], [], [], []
    for _ in range(num_tasks):
        w1.append(dense(next(it), hidden_dim, (hidden_dim, hidden_dim)))
        b1.append(dense(next(it), hidden_dim, (hidden_dim,)))
        w2.append(dense(next(it), hidden_dim, (hidden_dim, num_classes)))
        b2.append(dense(next(it), hidden_dim, (num_classes,)))

    # batched first head projection: [H, T*H]
    params["head_w1cat"] = jnp.concatenate(w1, axis=1).astype(jnp.bfloat16)
    params["head_b1cat"] = jnp.concatenate(b1, axis=0).reshape(1, num_tasks * hidden_dim)

    # lane-dense padded second head projection: pad classes to multiple of 128
    c_pad = ((num_classes + 127) // 128) * 128
    w2 = jnp.stack(w2)                                                       # [T, H, C]
    b2 = jnp.stack(b2)                                                       # [T, C]
    params["head_w2_pad"] = jnp.pad(
        w2, ((0, 0), (0, 0), (0, c_pad - num_classes))).astype(jnp.bfloat16)  # [T, H, Cp]
    params["head_b2_pad"] = jnp.pad(
        b2, ((0, 0), (0, c_pad - num_classes)),
        constant_values=NEG_BIG).reshape(num_tasks, 1, c_pad)                 # [T, 1, Cp] f32
    return params


@functools.partial(jax.jit, static_argnames=("num_graphs", "num_classes"))
def baseline_forward(params, x, edge_index, batch, num_graphs, num_classes):
    a_hat = build_gcn_adjacency(edge_index, x.shape[0]).astype(jnp.bfloat16)
    pool_onehot, inv_counts = build_mean_pool(batch, num_graphs)
    preds = fused_forward(x, a_hat, pool_onehot, inv_counts, params, num_classes)
    return jnp.transpose(preds, (1, 2, 0))            # [B, C, T]


# ------------------------------------------------------------------- main ---

if __name__ == "__main__":
    N_NODES, IN_FEATURES, HIDDEN = 32, 16, 32
    NUM_CLASSES, NUM_TASKS, LAYERS = 4, 3, 2
    NUM_GRAPHS, NUM_EDGES = 4, 64

    key = jax.random.PRNGKey(0)
    k_x, k_e, k_p = jax.random.split(key, 3)

    x = jax.random.normal(k_x, (N_NODES, IN_FEATURES), jnp.float32)
    edge_index = jax.random.randint(k_e, (2, NUM_EDGES), 0, N_NODES, jnp.int32)
    batch = jnp.repeat(jnp.arange(NUM_GRAPHS, dtype=jnp.int32),
                       N_NODES // NUM_GRAPHS)

    params = init_params(k_p, IN_FEATURES, HIDDEN, NUM_CLASSES, LAYERS, NUM_TASKS)

    out = baseline_forward(params, x, edge_index, batch, NUM_GRAPHS, NUM_CLASSES)
    out = jax.block_until_ready(out)
    assert out.shape == (NUM_GRAPHS, NUM_CLASSES, NUM_TASKS), out.shape
    assert bool(jnp.all(jnp.isfinite(out)))
    # each task's log_softmax should sum to ~1 in prob space
    probs = jnp.exp(out).sum(axis=1)
    assert bool(jnp.allclose(probs, 1.0, atol=1e-3))
    print("KERNEL_OK")
</pallas_src>

<mosaic_0001>
module attributes {stable_mosaic.version = 11 : i64} {
  func.func private @main(%arg0: i32) attributes {dimension_semantics = [#tpu.dimension_semantics<core_parallel>], iteration_bounds = array<i64: 2>, tpu.core_type = #tpu.core_type<sc_scalar_subcore>, window_params = []} {
    return
  }
}

module attributes {stable_mosaic.version = 11 : i64} {
  func.func private @main(%arg0: i32) attributes {dimension_semantics = [#tpu.dimension_semantics<core_parallel>], iteration_bounds = array<i64: 2>, tpu.core_type = #tpu.core_type<sc_scalar_subcore>, window_params = []} {
    return
  }
}

module attributes {stable_mosaic.version = 11 : i64} {
  func.func @_fused_forward_kernel(%arg0: memref<32x16xf32, #tpu.memory_space<vmem>>, %arg1: memref<32x32xbf16, #tpu.memory_space<vmem>>, %arg2: memref<4x32xbf16, #tpu.memory_space<vmem>>, %arg3: memref<4x1xf32, #tpu.memory_space<vmem>>, %arg4: memref<16x32xbf16, #tpu.memory_space<vmem>>, %arg5: memref<1x32xf32, #tpu.memory_space<vmem>>, %arg6: memref<2x32x32xbf16, #tpu.memory_space<vmem>>, %arg7: memref<2x1x32xf32, #tpu.memory_space<vmem>>, %arg8: memref<32x96xbf16, #tpu.memory_space<vmem>>, %arg9: memref<1x96xf32, #tpu.memory_space<vmem>>, %arg10: memref<3x32x128xbf16, #tpu.memory_space<vmem>>, %arg11: memref<3x1x128xf32, #tpu.memory_space<vmem>>, %arg12: memref<3x4x128xf32, #tpu.memory_space<vmem>>) attributes {dimension_semantics = [], scalar_prefetch = 0 : i64, scratch_operands = 0 : i64, tpu.core_type = #tpu.core_type<tc>} {
    %c0 = arith.constant 0 : index
    %c0_0 = arith.constant 0 : index
    %0 = vector.load %arg0[%c0, %c0_0] : memref<32x16xf32, #tpu.memory_space<vmem>>, vector<32x16xf32>
    %1 = arith.truncf %0 : vector<32x16xf32> to vector<32x16xbf16>
    %c0_1 = arith.constant 0 : index
    %c0_2 = arith.constant 0 : index
    %2 = vector.load %arg4[%c0_1, %c0_2] : memref<16x32xbf16, #tpu.memory_space<vmem>>, vector<16x32xbf16>
    %cst = arith.constant dense<0.000000e+00> : vector<32x32xf32>
    %3 = tpu.matmul %1, %2, %cst {dimension_numbers = #tpu.dot_dimension_numbers<[1], [0], [0], [1], [0, 0, 1, 1], [], []>} : vector<32x16xbf16>, vector<16x32xbf16>, vector<32x32xf32> -> vector<32x32xf32>
    %c0_3 = arith.constant 0 : index
    %c0_4 = arith.constant 0 : index
    %4 = vector.load %arg5[%c0_3, %c0_4] : memref<1x32xf32, #tpu.memory_space<vmem>>, vector<1x32xf32>
    %5 = vector.broadcast %4 : vector<1x32xf32> to vector<32x32xf32>
    %6 = arith.addf %3, %5 : vector<32x32xf32>
    %cst_5 = arith.constant 0.000000e+00 : f32
    %7 = vector.broadcast %cst_5 : f32 to vector<32x32xf32>
    %8 = arith.maximumf %6, %7 : vector<32x32xf32>
    %c0_6 = arith.constant 0 : index
    %c0_7 = arith.constant 0 : index
    %9 = vector.load %arg1[%c0_6, %c0_7] : memref<32x32xbf16, #tpu.memory_space<vmem>>, vector<32x32xbf16>
    %c0_i32 = arith.constant 0 : i32
    %c2_i32 = arith.constant 2 : i32
    %10 = arith.addi %c0_i32, %c2_i32 : i32
    %c1_i32 = arith.constant 1 : i32
    %11 = scf.for %arg13 = %c0_i32 to %10 step %c1_i32 iter_args(%arg14 = %8) -> (vector<32x32xf32>)  : i32 {
      %69 = arith.truncf %arg14 : vector<32x32xf32> to vector<32x32xbf16>
      %70 = arith.index_cast %arg13 : i32 to index
      %c0_44 = arith.constant 0 : index
      %c0_45 = arith.constant 0 : index
      %71 = vector.load %arg6[%70, %c0_44, %c0_45] : memref<2x32x32xbf16, #tpu.memory_space<vmem>>, vector<1x32x32xbf16>
      %72 = vector.shape_cast %71 : vector<1x32x32xbf16> to vector<32x32xbf16>
      %cst_46 = arith.constant dense<0.000000e+00> : vector<32x32xf32>
      %73 = tpu.matmul %69, %72, %cst_46 {dimension_numbers = #tpu.dot_dimension_numbers<[1], [0], [0], [1], [0, 0, 1, 1], [], []>} : vector<32x32xbf16>, vector<32x32xbf16>, vector<32x32xf32> -> vector<32x32xf32>
      %74 = arith.truncf %73 : vector<32x32xf32> to vector<32x32xbf16>
      %cst_47 = arith.constant dense<0.000000e+00> : vector<32x32xf32>
      %75 = tpu.matmul %9, %74, %cst_47 {dimension_numbers = #tpu.dot_dimension_numbers<[1], [0], [0], [1], [0, 0, 1, 1], [], []>} : vector<32x32xbf16>, vector<32x32xbf16>, vector<32x32xf32> -> vector<32x32xf32>
      %76 = arith.index_cast %arg13 : i32 to index
      %c0_48 = arith.constant 0 : index
      %c0_49 = arith.constant 0 : index
      %77 = vector.load %arg7[%76, %c0_48, %c0_49] : memref<2x1x32xf32, #tpu.memory_space<vmem>>, vector<1x1x32xf32>
      %78 = vector.shape_cast %77 : vector<1x1x32xf32> to vector<1x32xf32>
      %79 = vector.broadcast %78 : vector<1x32xf32> to vector<32x32xf32>
      %80 = arith.addf %75, %79 : vector<32x32xf32>
      %cst_50 = arith.constant 0.000000e+00 : f32
      %81 = vector.broadcast %cst_50 : f32 to vector<32x32xf32>
      %82 = arith.maximumf %80, %81 : vector<32x32xf32>
      %83 = vector.shape_cast %82 : vector<32x32xf32> to vector<1x32x32xf32>
      %cst_51 = arith.constant dense<0.000000e+00> : vector<1xf32>
      %84 = vector.multi_reduction <add>, %83, %cst_51 [1, 2] : vector<1x32x32xf32> to vector<1xf32>
      %85 = vector.shape_cast %84 : vector<1xf32> to vector<1x1x1xf32>
      %86 = vector.extract %85[0, 0, 0] : f32 from vector<1x1x1xf32>
      %87 = arith.mulf %82, %82 : vector<32x32xf32>
      %88 = vector.shape_cast %87 : vector<32x32xf32> to vector<1x32x32xf32>
      %cst_52 = arith.constant dense<0.000000e+00> : vector<1xf32>
      %89 = vector.multi_reduction <add>, %88, %cst_52 [1, 2] : vector<1x32x32xf32> to vector<1xf32>
      %90 = vector.shape_cast %89 : vector<1xf32> to vector<1x1x1xf32>
      %91 = vector.extract %90[0, 0, 0] : f32 from vector<1x1x1xf32>
      %cst_53 = arith.constant 9.765625E-4 : f32
      %92 = arith.mulf %86, %cst_53 : f32
      %cst_54 = arith.constant 9.765625E-4 : f32
      %93 = arith.mulf %91, %cst_54 : f32
      %94 = arith.mulf %92, %92 : f32
      %95 = arith.subf %93, %94 : f32
      %cst_55 = arith.constant 0.000000e+00 : f32
      %96 = arith.maximumf %95, %cst_55 : f32
      %97 = vector.broadcast %92 : f32 to vector<32x32xf32>
      %98 = arith.subf %82, %97 : vector<32x32xf32>
      %cst_56 = arith.constant 9.99999974E-6 : f32
      %99 = arith.addf %96, %cst_56 : f32
      %100 = math.rsqrt %99 : f32
      %101 = vector.broadcast %100 : f32 to vector<32x32xf32>
      %102 = arith.mulf %98, %101 : vector<32x32xf32>
      scf.yield %102 : vector<32x32xf32>
    }
    %c2_i32_8 = arith.constant 2 : i32
    %c0_9 = arith.constant 0 : index
    %c0_10 = arith.constant 0 : index
    %12 = vector.load %arg2[%c0_9, %c0_10] : memref<4x32xbf16, #tpu.memory_space<vmem>>, vector<4x32xbf16>
    %13 = arith.truncf %11 : vector<32x32xf32> to vector<32x32xbf16>
    %cst_11 = arith.constant dense<0.000000e+00> : vector<4x32xf32>
    %14 = tpu.matmul %12, %13, %cst_11 {dimension_numbers = #tpu.dot_dimension_numbers<[1], [0], [0], [1], [0, 0, 1, 1], [], []>} : vector<4x32xbf16>, vector<32x32xbf16>, vector<4x32xf32> -> vector<4x32xf32>
    %c0_12 = arith.constant 0 : index
    %c0_13 = arith.constant 0 : index
    %15 = vector.load %arg3[%c0_12, %c0_13] : memref<4x1xf32, #tpu.memory_space<vmem>>, vector<4x1xf32>
    %16 = vector.broadcast %15 : vector<4x1xf32> to vector<4x32xf32>
    %17 = arith.mulf %14, %16 : vector<4x32xf32>
    %18 = arith.truncf %17 : vector<4x32xf32> to vector<4x32xbf16>
    %c0_14 = arith.constant 0 : index
    %c0_15 = arith.constant 0 : index
    %19 = vector.load %arg8[%c0_14, %c0_15] : memref<32x96xbf16, #tpu.memory_space<vmem>>, vector<32x96xbf16>
    %cst_16 = arith.constant dense<0.000000e+00> : vector<4x96xf32>
    %20 = tpu.matmul %18, %19, %cst_16 {dimension_numbers = #tpu.dot_dimension_numbers<[1], [0], [0], [1], [0, 0, 1, 1], [], []>} : vector<4x32xbf16>, vector<32x96xbf16>, vector<4x96xf32> -> vector<4x96xf32>
    %c0_17 = arith.constant 0 : index
    %c0_18 = arith.constant 0 : index
    %21 = vector.load %arg9[%c0_17, %c0_18] : memref<1x96xf32, #tpu.memory_space<vmem>>, vector<1x96xf32>
    %22 = vector.broadcast %21 : vector<1x96xf32> to vector<4x96xf32>
    %23 = arith.addf %20, %22 : vector<4x96xf32>
    %cst_19 = arith.constant 0.000000e+00 : f32
    %24 = vector.broadcast %cst_19 : f32 to vector<4x96xf32>
    %25 = arith.maximumf %23, %24 : vector<4x96xf32>
    %26 = vector.extract_strided_slice %25 {offsets = [0, 0], sizes = [4, 32], strides = [1, 1]} : vector<4x96xf32> to vector<4x32xf32>
    %27 = arith.truncf %26 : vector<4x32xf32> to vector<4x32xbf16>
    %c0_20 = arith.constant 0 : index
    %c0_21 = arith.constant 0 : index
    %c0_22 = arith.constant 0 : index
    %28 = vector.load %arg10[%c0_20, %c0_21, %c0_22] : memref<3x32x128xbf16, #tpu.memory_space<vmem>>, vector<1x32x128xbf16>
    %29 = vector.shape_cast %28 : vector<1x32x128xbf16> to vector<32x128xbf16>
    %cst_23 = arith.constant dense<0.000000e+00> : vector<4x128xf32>
    %30 = tpu.matmul %27, %29, %cst_23 {dimension_numbers = #tpu.dot_dimension_numbers<[1], [0], [0], [1], [0, 0, 1, 1], [], []>} : vector<4x32xbf16>, vector<32x128xbf16>, vector<4x128xf32> -> vector<4x128xf32>
    %c0_24 = arith.constant 0 : index
    %c0_25 = arith.constant 0 : index
    %c0_26 = arith.constant 0 : index
    %31 = vector.load %arg11[%c0_24, %c0_25, %c0_26] : memref<3x1x128xf32, #tpu.memory_space<vmem>>, vector<1x1x128xf32>
    %32 = vector.shape_cast %31 : vector<1x1x128xf32> to vector<1x128xf32>
    %33 = vector.broadcast %32 : vector<1x128xf32> to vector<4x128xf32>
    %34 = arith.addf %30, %33 : vector<4x128xf32>
    %35 = vector.extract_strided_slice %25 {offsets = [0, 32], sizes = [4, 32], strides = [1, 1]} : vector<4x96xf32> to vector<4x32xf32>
    %36 = arith.truncf %35 : vector<4x32xf32> to vector<4x32xbf16>
    %c1 = arith.constant 1 : index
    %c0_27 = arith.constant 0 : index
    %c0_28 = arith.constant 0 : index
    %37 = vector.load %arg10[%c1, %c0_27, %c0_28] : memref<3x32x128xbf16, #tpu.memory_space<vmem>>, vector<1x32x128xbf16>
    %38 = vector.shape_cast %37 : vector<1x32x128xbf16> to vector<32x128xbf16>
    %cst_29 = arith.constant dense<0.000000e+00> : vector<4x128xf32>
    %39 = tpu.matmul %36, %38, %cst_29 {dimension_numbers = #tpu.dot_dimension_numbers<[1], [0], [0], [1], [0, 0, 1, 1], [], []>} : vector<4x32xbf16>, vector<32x128xbf16>, vector<4x128xf32> -> vector<4x128xf32>
    %c1_30 = arith.constant 1 : index
    %c0_31 = arith.constant 0 : index
    %c0_32 = arith.constant 0 : index
    %40 = vector.load %arg11[%c1_30, %c0_31, %c0_32] : memref<3x1x128xf32, #tpu.memory_space<vmem>>, vector<1x1x128xf32>
    %41 = vector.shape_cast %40 : vector<1x1x128xf32> to vector<1x128xf32>
    %42 = vector.broadcast %41 : vector<1x128xf32> to vector<4x128xf32>
    %43 = arith.addf %39, %42 : vector<4x128xf32>
    %44 = vector.extract_strided_slice %25 {offsets = [0, 64], sizes = [4, 32], strides = [1, 1]} : vector<4x96xf32> to vector<4x32xf32>
    %45 = arith.truncf %44 : vector<4x32xf32> to vector<4x32xbf16>
    %c2 = arith.constant 2 : index
    %c0_33 = arith.constant 0 : index
    %c0_34 = arith.constant 0 : index
    %46 = vector.load %arg10[%c2, %c0_33, %c0_34] : memref<3x32x128xbf16, #tpu.memory_space<vmem>>, vector<1x32x128xbf16>
    %47 = vector.shape_cast %46 : vector<1x32x128xbf16> to vector<32x128xbf16>
    %cst_35 = arith.constant dense<0.000000e+00> : vector<4x128xf32>
    %48 = tpu.matmul %45, %47, %cst_35 {dimension_numbers = #tpu.dot_dimension_numbers<[1], [0], [0], [1], [0, 0, 1, 1], [], []>} : vector<4x32xbf16>, vector<32x128xbf16>, vector<4x128xf32> -> vector<4x128xf32>
    %c2_36 = arith.constant 2 : index
    %c0_37 = arith.constant 0 : index
    %c0_38 = arith.constant 0 : index
    %49 = vector.load %arg11[%c2_36, %c0_37, %c0_38] : memref<3x1x128xf32, #tpu.memory_space<vmem>>, vector<1x1x128xf32>
    %50 = vector.shape_cast %49 : vector<1x1x128xf32> to vector<1x128xf32>
    %51 = vector.broadcast %50 : vector<1x128xf32> to vector<4x128xf32>
    %52 = arith.addf %48, %51 : vector<4x128xf32>
    %53 = vector.shape_cast %34 : vector<4x128xf32> to vector<1x4x128xf32>
    %54 = vector.shape_cast %43 : vector<4x128xf32> to vector<1x4x128xf32>
    %55 = vector.shape_cast %52 : vector<4x128xf32> to vector<1x4x128xf32>
    %56 = tpu.concatenate %53, %54, %55 in 0 : vector<1x4x128xf32>, vector<1x4x128xf32>, vector<1x4x128xf32> -> vector<3x4x128xf32>
    %cst_39 = arith.constant dense<0xFF800000> : vector<3x4xf32>
    %57 = vector.multi_reduction <maximumf>, %56, %cst_39 [2] : vector<3x4x128xf32> to vector<3x4xf32>
    %58 = vector.shape_cast %57 : vector<3x4xf32> to vector<3x4x1xf32>
    %59 = vector.broadcast %58 : vector<3x4x1xf32> to vector<3x4x128xf32>
    %60 = arith.subf %56, %59 : vector<3x4x128xf32>
    %61 = math.exp %60 : vector<3x4x128xf32>
    %cst_40 = arith.constant dense<0.000000e+00> : vector<3x4xf32>
    %62 = vector.multi_reduction <add>, %61, %cst_40 [2] : vector<3x4x128xf32> to vector<3x4xf32>
    %63 = vector.shape_cast %62 : vector<3x4xf32> to vector<3x4x1xf32>
    %64 = math.log %63 : vector<3x4x1xf32>
    %65 = arith.addf %64, %58 : vector<3x4x1xf32>
    %66 = vector.broadcast %65 : vector<3x4x1xf32> to vector<3x4x128xf32>
    %67 = arith.subf %56, %66 : vector<3x4x128xf32>
    %c0_41 = arith.constant 0 : index
    %c0_42 = arith.constant 0 : index
    %c0_43 = arith.constant 0 : index
    %68 = vector.load %arg12[%c0_41, %c0_42, %c0_43] : memref<3x4x128xf32, #tpu.memory_space<vmem>>, vector<3x4x128xf32>
    tpu.vector_store %arg12[%c0_41, %c0_42, %c0_43], %67 {strides = array<i32>} : memref<3x4x128xf32, #tpu.memory_space<vmem>>, vector<3x4x128xf32>,
    return
  }
}

</mosaic_0001>

<bundles_post_ra>
// kernel: mul.1
= control target key start
LH: loop header
LB: loop body
LE: loop exit
PB: predicated region body
PF: predicated region fallthrough
CT: control target
= control target key end

     0   :  { %s34_s0 = inlined_call_operand.vmem [shape: f32[96], index: 0, kind: input, shape index: {}]   ;;  %s35_s1 = inlined_call_operand.vmem [shape: f32[96], index: 1, kind: input, shape index: {}]   ;;  %s36_s2 = inlined_call_operand.vmem [shape: f32[96], index: 2, kind: output, shape index: {}]  }
   0x1   :  { %v3_v0 = vld [vmem:[%s34_s0] sm:$0x1] }
   0x2   :  { %v4_v1 = vld [vmem:[%s35_s1] sm:$0x1] }
   0x3   :  { %v7_v2 = vmul.f32 %v4_v1, %v3_v0 }
   0x5   :  { %9 = vst [vmem:[%s36_s2] sm:$0x1] %v7_v2 }

// kernel: baseline_forward.1
= control target key start
LH: loop header
LB: loop body
LE: loop exit
PB: predicated region body
PF: predicated region fallthrough
CT: control target
= control target key end

     0   :  { %vm63_vm0 = vcmask 130048   ;;  %s1228_s2 = inlined_call_operand.vmem [shape: bf16[4,32], index: 2, kind: input, shape index: {}]   ;;  %s1229_s3 = inlined_call_operand.vmem [shape: f32[4,1], index: 3, kind: input, shape index: {}]   ;;  %s1230_s4 = inlined_call_operand.vmem [shape: bf16[16,32], index: 4, kind: input, shape index: {}]   ;;  %s1231_s6 = inlined_call_operand.vmem [shape: bf16[2,32,32], index: 6, kind: input, shape index: {}]   ;;  %s1232_s7 = inlined_call_operand.vmem [shape: f32[2,1,32], index: 7, kind: input, shape index: {}]   ;;  %s1233_s8 = inlined_call_operand.vmem [shape: bf16[32,96], index: 8, kind: input, shape index: {}]   ;;  %s1234_s9 = inlined_call_operand.vmem [shape: f32[1,96], index: 9, kind: input, shape index: {}]   ;;  %s1235_s10 = inlined_call_operand.vmem [shape: bf16[3,32,128], index: 10, kind: input, shape index: {}]   ;;  %s1236_s11 = inlined_call_operand.vmem [shape: f32[3,1,128], index: 11, kind: input, shape index: {}]   ;;  %s1237_s12 = inlined_call_operand.vmem [shape: f32[3,4,128], index: 12, kind: output, shape index: {}]   ;;  %s1238_s0 = inlined_call_operand.vmem [shape: f32[32,16], index: 0, kind: input, shape index: {}]   ;;  %s1239_s1 = inlined_call_operand.vmem [shape: bf16[32,32], index: 1, kind: input, shape index: {}]   ;;  %s1240_s5 = inlined_call_operand.vmem [shape: f32[1,32], index: 5, kind: input, shape index: {}]  }
   0x1   :  { %v928_v0 = vld [vmem:[%s1230_s4] sm:$0xff]   ;;  %v43_v2 = vld [vmem:[%s1238_s0 + $0x8] sm:$0xff]  ;;  %v44_v3 = vld [vmem:[%s1238_s0 + $0x10] sm:$0xff] }
   0x2   :  { %v42_v1 = vld [vmem:[%s1238_s0] sm:$0xff]  ;;  %814 = vmatprep.subr.bf16.mxu0 %v928_v0  ;;  %v45_v5 = vld [vmem:[%s1238_s0 + $0x18] sm:$0xff]  ;;  %v1093_v9 = vld [vmem:[%s1239_s1 + $0x8] sm:$0xf] }
   0x3   :  { %v46_v4 = vpack.c.bf16 %v43_v2, %v42_v1  ;;  %815 = vmatpush3.bf16.msra.mxu0 %v928_v0  ;;  %v47_v6 = vpack.c.bf16 %v45_v5, %v44_v3  ;;  %v1083_v7 = vld [vmem:[%s1239_s1] sm:$0xf]  ;;  %v1088_v8 = vld [vmem:[%s1239_s1 + $0x4] sm:$0xf]  ;;  %v1098_v10 = vld [vmem:[%s1239_s1 + $0xc] sm:$0xf] }
   0x4   :  { %v745_v11 = vld [vmem:[%s1240_s5] ss:$0 sm:$0xff]  ;;  %s1111_s1 = smov 0  }
   0x5   :  { %816 = vmatprep.mubr.msk.bf16.mxu0 %vm63_vm0, %v46_v4 }
   0x6   :  { %817 = vmatmul.mubr.msk.bf16.vlgmr.msra.gmra.mrb[0].mxu0 %vm63_vm0, %v47_v6 }
  0xd9   :  { %v818_v12 = vpop.f32.mrb[0].mxu0 }
  0xda   :  { %v113_v13 = vadd.f32 %v818_v12, %v745_v11  ;;  %v104_v14 = vpop.f32.mrb[1].mxu0 }
  0xdb   :  { %v105_v15 = vadd.f32 %v745_v11, %v104_v14  ;;  %v819_v16 = vpop.f32.mrb[2].mxu0 }
  0xdc   :  { %v121_v17 = vmax.f32 %v113_v13, 0.0   ;;  %v116_v18 = vadd.f32 %v819_v16, %v745_v11  ;;  %v107_v19 = vpop.f32.mrb[3].mxu0 }
  0xdd   :  { %v119_v20 = vmax.f32 %v105_v15, 0.0   ;;  %v108_v21 = vadd.f32 %v745_v11, %v107_v19 }
  0xde   :  { %v122_v22 = vmax.f32 %v116_v18, 0.0  }
  0xdf   :  { %v120_v23 = vmax.f32 %v108_v21, 0.0  }
  0xe0 LB: > { %vm158_vm1 = vcmask 261120   ;;  %s787_s5 = sshll.u32 %s992_s1, 4  ;;  %v137_v24 = vpack.c.bf16 %v984_v23, %v988_v20  ;;  %v138_v27 = vpack.c.bf16 %v976_v22, %v980_v17  ;;  %v756_v28 = vcombine.low %v1083_v7, %v1088_v8  ;;  %s216_s26 = scalar_lea.vmem %s1232_s7, %s992_s1  ;;  %s992_s1 = sphi %s1111_s1, %s132_s1   ;;  %v988_v20 = vphi %v119_v20, %v1244_v20   ;;  %v984_v23 = vphi %v120_v23, %v1243_v23   ;;  %v980_v17 = vphi %v121_v17, %v1242_v17   ;;  %v976_v22 = vphi %v122_v22, %v1241_v22  }
  0xe1   : > { %s141_s23 = scalar_lea.vmem %s1231_s6, %s787_s5  ;;  %v757_v35 = vcombine.low %v1093_v9, %v1098_v10  ;;  %v755_v36 = vld [vmem:[%s216_s26] ss:$0 sm:$0xff]  ;;  %s994_s14 = smov 0.0  }
  0xe2   : > { %v929_v25 = vld [vmem:[%s141_s23] sm:$0xff]   ;;  %824 = vmatprep.mubr.msk.bf16.mxu0 %vm158_vm1, %v137_v24  ;;  %v930_v26 = vld [vmem:[%s141_s23 + $0x8] sm:$0xff]   ;;  %832 = vmatprep.mubr.msk.bf16.mxu1 %vm158_vm1, %v756_v28  ;;  %s132_s1 = sadd.s32 1, %s992_s1  }
  0xe3   : > { %820 = vmatprep.subr.bf16.mxu0 %v929_v25  ;;  %p129_p0 = scmp.ge.s32.totalorder %s132_s1, 2  }
  0xe4   : > { %821 = vmatpush3.bf16.msra.mxu0 %v929_v25  ;;  %vm996_vm2 = vmmov (%p129_p0), 0   ;;  %v348_v7 = vld [vmem:[%s1228_s2] sm:$0x3] (%p129_p0)  ;;  %v935_v8 = vld [vmem:[%s1233_s8 + $0x8] sm:$0xff] (%p129_p0)   ;;  %vm678_vm3 = vcmask (%p129_p0), 1043456  }
  0xe5   : > { %822 = vmatprep.subr.bf16.mxu0 %v930_v26 }
  0xe8   : > { %823 = vmatpush3.bf16.msra.mxu0 %v930_v26 }
  0xeb   : > { %825 = vmatmul.mubr.msk.bf16.vlgmr.msra.gmra.mrb[0].mxu0 %vm158_vm1, %v138_v27 }
 0x1be   : > { %v826_v29 = vpop.f32.mrb[0].mxu0 }
 0x1bf   : > { %v199_v30 = vpop.f32.mrb[1].mxu0 }
 0x1c0   : > { %v827_v31 = vpop.f32.mrb[2].mxu0 }
 0x1c1   : > { %v215_v32 = vpack.c.bf16 %v827_v31, %v826_v29  ;;  %v202_v33 = vpop.f32.mrb[3].mxu0 }
 0x1c2   : > { %v214_v34 = vpack.c.bf16 %v202_v33, %v199_v30 }
 0x1c4   : > { %828 = vmatprep.subr.bf16.mxu1 %v214_v34 }
 0x1c5   : > { %829 = vmatpush3.bf16.msra.mxu1 %v214_v34  ;;  %v395_v34 = vld [vmem:[%s1229_s3] sm:$0xf] (%p129_p0) }
 0x1c6   : > { %830 = vmatprep.subr.bf16.mxu1 %v215_v32 }
 0x1c9   : > { %831 = vmatpush3.bf16.msra.mxu1 %v215_v32 }
 0x1cc   : > { %833 = vmatmul.mubr.msk.bf16.vlgmr.msra.gmra.mrb[0].mxu1 %vm158_vm1, %v757_v35  ;;  %v995_v35 = vmov (%p129_p0), 0.0  }
 0x1cd   :  { %836 = vmatprep.subr.bf16.mxu0 (%p129_p0), %v995_v35  ;;  %840 = vmatprep.mubr.msk.bf16.mxu0 (%p129_p0), %vm996_vm2, %v995_v35 }
 0x1ce   :  { %844 = vmatprep.subr.bf16.mxu1 (%p129_p0), %v995_v35  ;;  %848 = vmatprep.mubr.msk.bf16.mxu1 (%p129_p0), %vm996_vm2, %v995_v35 }
 0x29f   : > { %v834_v37 = vpop.f32.mrb[0].mxu1 }
 0x2a0   : > { %v283_v38 = vadd.f32 %v834_v37, %v755_v36  ;;  %v274_v39 = vpop.f32.mrb[1].mxu1 }
 0x2a1   : > { %v275_v40 = vadd.f32 %v755_v36, %v274_v39  ;;  %v835_v41 = vpop.f32.mrb[2].mxu1 }
 0x2a2   : > { %v1136_v42 = vmax.f32 %v283_v38, 0.0  ;;  %v277_v43 = vpop.f32.mrb[3].mxu1  ;;  %v286_v45 = vadd.f32 %v835_v41, %v755_v36  ;;  %v997_v38 = vmov (%p129_p0), 0  }
 0x2a3   : > { %v289_v44 = vmax.f32 %v275_v40, 0.0  ;;  %v278_v46 = vadd.f32 %v755_v36, %v277_v43  ;;  %v934_v36 = vld [vmem:[%s1233_s8] sm:$0xff] (%p129_p0)   ;;  %933 = vset.pattern.permute.xlu0 (%p129_p0), %v997_v38 }
 0x2a4   : > { %v311_v49 = vmul.f32 %v1136_v42, %v1136_v42  ;;  %v292_v50 = vmax.f32 %v286_v45, 0.0  ;;  %v296_v55 = vsel %vm158_vm1, %v1136_v42, 0.0  ;;  %845 = vmatpush3.bf16.msra.mxu1 (%p129_p0), %v934_v36  ;;  %v937_v45 = vld [vmem:[%s1235_s10 + $0x8] sm:$0xff] (%p129_p0)  }
 0x2a5   : > { %v309_v47 = vmul.f32 %v289_v44, %v289_v44  ;;  %v290_v48 = vmax.f32 %v278_v46, 0.0  ;;  %v293_v52 = vsel %vm158_vm1, %v289_v44, 0.0  ;;  %846 = vmatprep.subr.bf16.mxu1 (%p129_p0), %v995_v35  ;;  %v938_v46 = vld [vmem:[%s1235_s10 + $0x10] sm:$0xff] (%p129_p0)  }
 0x2a6   : > { %v298_v60 = vsel %vm158_vm1, %v292_v50, 0.0  ;;  %v312_v61 = vmul.f32 %v292_v50, %v292_v50  ;;  %v316_v62 = vsel %vm158_vm1, %v311_v49, 0.0 }
 0x2a7   : > { %v310_v51 = vmul.f32 %v290_v48, %v290_v48  ;;  %v294_v53 = vsel %vm158_vm1, %v290_v48, 0.0  ;;  %v313_v56 = vsel %vm158_vm1, %v309_v47, 0.0  ;;  %v940_v47 = vld [vmem:[%s1235_s10 + $0x18] sm:$0xff] (%p129_p0)  }
 0x2a8   : > { %v295_v54 = vadd.f32 %v294_v53, %v293_v52  ;;  %v318_v1 = vsel %vm158_vm1, %v312_v61, 0.0  ;;  %847 = vmatpush3.bf16.msra.mxu1 (%p129_p0), %v935_v8 }
 0x2a9   : > { %v314_v57 = vsel %vm158_vm1, %v310_v51, 0.0  ;;  %860 = vmatprep.subr.bf16.mxu1 (%p129_p0), %v995_v35 }
 0x2aa   : > { %v297_v58 = vadd.f32 %v296_v55, %v295_v54  ;;  %v315_v59 = vadd.f32 %v314_v57, %v313_v56  ;;  %v939_v56 = vld [vmem:[%s1235_s10 + $0x20] sm:$0xff] (%p129_p0)   ;;  %v941_v57 = vld [vmem:[%s1235_s10 + $0x28] sm:$0xff] (%p129_p0)  }
 0x2ac   : > { %v299_v63 = vadd.f32 %v298_v60, %v297_v58  ;;  %v317_v0 = vadd.f32 %v316_v62, %v315_v59  ;;  %v765_v60 = vld [vmem:[%s1236_s11] ss:$0 sm:$0xff] (%p129_p0) }
 0x2ae   : > { %300 = vadd.xlane.f32.xlu0 %v299_v63  ;;  %v319_v2 = vadd.f32 %v318_v1, %v317_v0 }
 0x2b2   : > { %320 = vadd.xlane.f32.xlu0 %v319_v2 }
 0x2c8   :  { %398 = vperm.xlu0 (%p129_p0), %933, %v395_v34  }
 0x33b   : > { %v301_v3 = vpop.xlane.xlu0 %300 }
 0x33c   : > { %v302_v4 = vrot.slane %v301_v3, 4 }
 0x33e   : > { %v303_v5 = vadd.f32 %v302_v4, %v301_v3  ;;  %v774_v3 = vld [vmem:[%s1236_s11 + $0x1] ss:$0 sm:$0xff] (%p129_p0) }
 0x33f   : > { %v321_v6 = vpop.xlane.xlu0 %320 }
 0x340   : > { %v304_v11 = vrot.slane %v303_v5, 2  ;;  %v322_v12 = vrot.slane %v321_v6, 4 }
 0x342   : > { %v323_v13 = vadd.f32 %v322_v12, %v321_v6  ;;  %v305_v14 = vadd.f32 %v304_v11, %v303_v5  ;;  %v783_v5 = vld [vmem:[%s1236_s11 + $0x2] ss:$0 sm:$0xff] (%p129_p0) }
 0x344   : > { %v324_v15 = vrot.slane %v323_v13, 2  ;;  %v306_v16 = vrot.slane %v305_v14, 1 }
 0x346   : > { %v325_v17 = vadd.f32 %v324_v15, %v323_v13  ;;  %v307_v18 = vadd.f32 %v306_v16, %v305_v14 }
 0x347   :  { %v399_v9 = vpop.permute.xlu0 (%p129_p0), %398 }
 0x348   : > { %876 = vpush %v307_v18  ;;  %v326_v19 = vrot.slane %v325_v17, 1 }
 0x34a   : > { %v327_v20 = vadd.f32 %v326_v19, %v325_v17 }
 0x34c   : > { %878 = vpush %v327_v20 }
 0x379   : > { %s877_s27 = spop %876 }
 0x37a   : > { %s329_s28 = smul.f32 0.0009765625, %s877_s27 }
 0x37c   : > { %s331_s29 = smul.f32 %s329_s28, %s329_s28  ;;  %v334_v23 = vstv %s329_s28 }
 0x37d   : > { %s879_s30 = spop %878  ;;  %v335_v24 = vsub.f32 %v289_v44, %v334_v23  ;;  %v336_v25 = vsub.f32 %v290_v48, %v334_v23  ;;  %v337_v26 = vsub.f32 %v1136_v42, %v334_v23  ;;  %v338_v27 = vsub.f32 %v292_v50, %v334_v23  ;;  %v936_v44 = vld [vmem:[%s1235_s10] sm:$0xff] (%p129_p0)  }
 0x37e   : > { %s330_s4 = smul.f32 0.0009765625, %s879_s30  ;;  %v761_v48 = vld [vmem:[%s1234_s9] ss:$0 sm:$0xff] (%p129_p0)  ;;  %s998_s30 = smov (%p129_p0), 64  }
 0x380   : > { %s332_s13 = ssub.f32 %s330_s4, %s331_s29  ;;  %s999_s4 = smov (%p129_p0), 96  }
 0x382   : > { %s333_s15 = smax.f32 %s994_s14, %s332_s13 }
 0x383   : > { %s339_s16 = sadd.f32 1e-05, %s333_s15 }
 0x385   : > { %v340_v21 = vstv %s339_s16 }
 0x386   : > { %931 = vrsqrt.f32 %v340_v21 }
 0x390   : > { %v932_v22 = vpop.eup %931 }
 0x391   : > { %880 = vpush %v932_v22 }
 0x3c0   :  { %131 = sbr.rel (!%p129_p0) target bundleno = 224 (0xe0), region = 81 }
 0x3c2   : > { %s881_s17 = spop %880 }
 0x3c3   : > { %v343_v28 = vstv %s881_s17 }
 0x3c4   : > { %v344_v29 = vmul.f32 %v343_v28, %v335_v24   ;;  %v345_v30 = vmul.f32 %v343_v28, %v336_v25   ;;  %v346_v31 = vmul.f32 %v343_v28, %v337_v26   ;;  %v347_v32 = vmul.f32 %v343_v28, %v338_v27  }
 0x3c6   : > { %v1241_v22 = vmov %v347_v32  ;;  %v1242_v17 = vmov %v346_v31  ;;  %v1243_v23 = vmov %v345_v30  ;;  %v1244_v20 = vmov %v344_v29 }
 0x3c7   :  { %v349_v33 = vpack.c.bf16 %v345_v30, %v344_v29  ;;  %v350_v37 = vpack.c.bf16 %v347_v32, %v346_v31 }
 0x3c9   :  { %837 = vmatpush3.bf16.msra.mxu0 %v349_v33 }
 0x3ca   :  { %838 = vmatprep.subr.bf16.mxu0 %v995_v35 }
 0x3cd   :  { %839 = vmatpush3.bf16.msra.mxu0 %v350_v37 }
 0x3ce   :  { %852 = vmatprep.subr.bf16.mxu0 %v995_v35 }
 0x3d0   :  { %841 = vmatmul.mubr.msk.bf16.vlgmr.msra.gmra.mrb[0].mxu0 %vm158_vm1, %v348_v7 }
 0x3d1   :  { %856 = vmatprep.mubr.msk.bf16.mxu0 %vm996_vm2, %v995_v35  ;;  %853 = vmatpush3.bf16.msra.mxu0 %v936_v44 }
 0x3d2   :  { %854 = vmatprep.subr.bf16.mxu0 %v995_v35 }
 0x3d5   :  { %855 = vmatpush3.bf16.msra.mxu0 %v937_v45 }
 0x3d6   :  { %868 = vmatprep.subr.bf16.mxu0 %v995_v35 }
 0x4a3   :  { %v389_v10 = vpop.f32.mrb[0].mxu0 }
 0x4a4   :  { %v401_v39 = vmul.f32 %v399_v9, %v389_v10  ;;  %v842_v40 = vpop.f32.mrb[1].mxu0 }
 0x4a5   :  { %v392_v41 = vpop.f32.mrb[2].mxu0 }
 0x4a6   :  { %v402_v42 = vpack.c.bf16 %v401_v39, %v401_v39  ;;  %v843_v43 = vpop.f32.mrb[3].mxu0 }
 0x4a8   :  { %849 = vmatmul.mubr.msk.bf16.vlgmr.msra.gmra.mrb[0].mxu1 %vm158_vm1, %v402_v42 }
 0x4a9   :  { %864 = vmatprep.mubr.msk.bf16.mxu1 %vm996_vm2, %v995_v35  ;;  %861 = vmatpush3.bf16.msra.mxu1 %v938_v46 }
 0x4aa   :  { %862 = vmatprep.subr.bf16.mxu1 %v995_v35 }
 0x4ad   :  { %863 = vmatpush3.bf16.msra.mxu1 %v940_v47 }
 0x57b   :  { %v463_v49 = vpop.f32.mrb[0].mxu1 }
 0x57c   :  { %v464_v50 = vadd.f32 %v761_v48, %v463_v49  ;;  %v850_v51 = vpop.f32.mrb[1].mxu1 }
 0x57d   :  { %v466_v52 = vpop.f32.mrb[2].mxu1 }
 0x57e   :  { %v469_v53 = vmax.f32 %v464_v50, 0.0  ;;  %v851_v54 = vpop.f32.mrb[3].mxu1 }
 0x580   :  { %v470_v55 = vpack.c.bf16 %v469_v53, %v469_v53 }
 0x582   :  { %621 = vrot.lane.b32.xlu1 %v470_v55, %s998_s30  ;;  %551 = vrot.lane.b32.xlu0 %v470_v55, %s999_s4 }
 0x583   :  { %857 = vmatmul.mubr.msk.bf16.vlgmr.msra.gmra.mrb[4].mxu0 %vm158_vm1, %v470_v55 }
 0x584   :  { %869 = vmatpush3.bf16.msra.mxu0 %v939_v56  ;;  %872 = vmatprep.mubr.msk.bf16.mxu0 %vm996_vm2, %v995_v35 }
 0x585   :  { %870 = vmatprep.subr.bf16.mxu0 %v995_v35 }
 0x588   :  { %871 = vmatpush3.bf16.msra.mxu0 %v941_v57 }
 0x5f4   :  { %v622_v58 = vpop.permute.xlu1 %621  ;;  %v552_v59 = vpop.permute.xlu0 %551 }
 0x5f5   :  { %865 = vmatmul.mubr.msk.bf16.vlgmr.msra.gmra.mrb[4].mxu1 %vm158_vm1, %v552_v59  ;;  %873 = vmatmul.mubr.msk.bf16.vlgmr.msra.gmra.mrb[8].mxu0 %vm158_vm1, %v622_v58 }
 0x656   :  { %v531_v61 = vpop.f32.mrb[4].mxu0 }
 0x657   :  { %v532_v62 = vadd.f32 %v765_v60, %v531_v61  ;;  %v858_v63 = vpop.f32.mrb[5].mxu0 }
 0x658   :  { %v534_v0 = vpop.f32.mrb[6].mxu0 }
 0x659   :  { %v859_v1 = vpop.f32.mrb[7].mxu0  ;;  %v679_v2 = vsel %vm678_vm3, %v532_v62, -inf }
 0x65a   :  { %680 = vmax.xlane.f32.xlu1 %v679_v2 }
 0x6c8   :  { %v602_v4 = vpop.f32.mrb[4].mxu1  ;;  %v672_v6 = vpop.f32.mrb[8].mxu0 }
 0x6c9   :  { %v603_v11 = vadd.f32 %v774_v3, %v602_v4  ;;  %v866_v12 = vpop.f32.mrb[5].mxu1  ;;  %v874_v13 = vpop.f32.mrb[9].mxu0  ;;  %v673_v16 = vadd.f32 %v783_v5, %v672_v6 }
 0x6ca   :  { %v605_v14 = vpop.f32.mrb[6].mxu1  ;;  %v675_v15 = vpop.f32.mrb[10].mxu0 }
 0x6cb   :  { %v867_v17 = vpop.f32.mrb[7].mxu1  ;;  %v875_v18 = vpop.f32.mrb[11].mxu0  ;;  %v682_v19 = vsel %vm678_vm3, %v603_v11, -inf  ;;  %v685_v20 = vsel %vm678_vm3, %v673_v16, -inf }
 0x6cc   :  { %683 = vmax.xlane.f32.xlu0 %v682_v19 }
 0x6d0   :  { %686 = vmax.xlane.f32.xlu0 %v685_v20 }
 0x6e7   :  { %v681_v21 = vpop.xlane.xlu1 %680 }
 0x6e8   :  { %v688_v22 = vsub.f32 %v532_v62, %v681_v21 }
 0x6ea   :  { %v691_v23 = vmul.f32 1.442695, %v688_v22 }
 0x6ec   :  { %942 = vpow2.f32 %v691_v23 }
 0x6f6   :  { %v943_v24 = vpop.eup %942 }
 0x6f7   :  { %v697_v25 = vsel %vm678_vm3, %v943_v24, 0.0 }
 0x6f8   :  { %698 = vadd.xlane.f32.xlu1 %v697_v25 }
 0x759   :  { %v684_v26 = vpop.xlane.xlu0 %683 }
 0x75a   :  { %v689_v27 = vsub.f32 %v603_v11, %v684_v26 }
 0x75c   :  { %v693_v28 = vmul.f32 1.442695, %v689_v27 }
 0x75d   :  { %v687_v29 = vpop.xlane.xlu0 %686 }
 0x75e   :  { %944 = vpow2.f32 %v693_v28  ;;  %v690_v30 = vsub.f32 %v673_v16, %v687_v29 }
 0x760   :  { %v695_v31 = vmul.f32 1.442695, %v690_v30 }
 0x762   :  { %946 = vpow2.f32 %v695_v31 }
 0x768   :  { %v945_v32 = vpop.eup %944 }
 0x769   :  { %v700_v33 = vsel %vm678_vm3, %v945_v32, 0.0 }
 0x76a   :  { %701 = vadd.xlane.f32.xlu0 %v700_v33 }
 0x76c   :  { %v947_v34 = vpop.eup %946 }
 0x76d   :  { %v703_v35 = vsel %vm678_vm3, %v947_v34, 0.0 }
 0x76e   :  { %704 = vadd.xlane.f32.xlu1 %v703_v35 }
 0x785   :  { %v699_v36 = vpop.xlane.xlu1 %698 }
 0x786   :  { %948 = vlog2.f32 %v699_v36 }
 0x790   :  { %v949_v37 = vpop.eup %948 }
 0x791   :  { %v707_v38 = vmul.f32 0.6931472, %v949_v37 }
 0x793   :  { %v712_v7 = vadd.f32 %v707_v38, %v681_v21 }
 0x795   :  { %v715_v8 = vsub.f32 %v532_v62, %v712_v7 }
 0x797   :  { %718 = vst [vmem:[%s1237_s12] sm:$0xf] %v715_v8 }
 0x7f7   :  { %v702_v9 = vpop.xlane.xlu0 %701 }
 0x7f8   :  { %950 = vlog2.f32 %v702_v9 }
 0x7fb   :  { %v705_v10 = vpop.xlane.xlu1 %704 }
 0x7fc   :  { %952 = vlog2.f32 %v705_v10 }
 0x802   :  { %v951_v39 = vpop.eup %950 }
 0x803   :  { %v709_v40 = vmul.f32 0.6931472, %v951_v39 }
 0x805   :  { %v713_v41 = vadd.f32 %v709_v40, %v684_v26 }
 0x806   :  { %v953_v42 = vpop.eup %952 }
 0x807   :  { %v716_v43 = vsub.f32 %v603_v11, %v713_v41  ;;  %v711_v44 = vmul.f32 0.6931472, %v953_v42 }
 0x809   :  { %719 = vst [vmem:[%s1237_s12 + $0x4] sm:$0xf] %v716_v43  ;;  %v714_v45 = vadd.f32 %v711_v44, %v687_v29 }
 0x80b   :  { %v717_v46 = vsub.f32 %v673_v16, %v714_v45 }
 0x80d   :  { %720 = vst [vmem:[%s1237_s12 + $0x8] sm:$0xf] %v717_v46 }

</bundles_post_ra>
